<compile_context>
chip_gen: v6e
topology: v6e:2x2x1
jax: 0.10.0
libtpu: 0.0.40
codegen_flags: <defaults>
</compile_context>

<pallas_src>
import functools

import jax
import jax.numpy as jnp
from jax.experimental import pallas as pl
from jax.experimental.pallas import tpu as pltpu


def _round_up(x, m):
    return ((x + m - 1) // m) * m


def _cdiv(a, b):
    return (a + b - 1) // b


def _erf(x):
    """Abramowitz & Stegun 7.1.26 erf approximation (|abs err| < 1.5e-7).

    The 1/(1+p|x|) divide uses the EUP approximate reciprocal refined by one
    Newton step on the VALU, so accuracy stays ~float32 (parity with the exact
    erf-based F.gelu) without putting a full-precision divide on the VALU path.
    """
    a1, a2, a3, a4, a5 = (0.254829592, -0.284496736, 1.421413741,
                          -1.453152027, 1.061405429)
    p = 0.3275911
    sign = jnp.where(x < 0.0, -1.0, 1.0)
    ax = jnp.abs(x)
    denom = 1.0 + p * ax
    r = pl.reciprocal(denom, approx=True)
    t = r * (2.0 - denom * r)            # one Newton step -> ~f32-accurate 1/denom
    poly = ((((a5 * t + a4) * t + a3) * t + a2) * t + a1) * t
    y = 1.0 - poly * jnp.exp(-ax * ax)
    return sign * y


def _gelu_exact(x):
    # F.gelu default (erf-based): 0.5 * x * (1 + erf(x / sqrt(2)))
    return 0.5 * x * (1.0 + _erf(x * 0.7071067811865476))


def output_process_kernel(x_ref, w1_ref, b1_ref, g_ref, beta_ref, w2_ref,
                          b2_ref, o_ref, *, d_real):
    matmul_dtype = w1_ref.dtype
    x = x_ref[...]
    if x.dtype != matmul_dtype:          # only when the wrapper streamed x untouched
        x = x.astype(matmul_dtype)

    # dense: x @ W1 + b1  (W1 pre-transposed to (in, out), pre-padded, pre-cast)
    h = jnp.dot(x, w1_ref[...], preferred_element_type=jnp.float32)
    h = h + b1_ref[...]

    # exact (erf) GELU; padded lanes stay exactly 0 (zero x cols, zero b1 pad)
    h = _gelu_exact(h)

    # LayerNorm over the real D lanes, eps = 1e-12 (two-pass, torch-like numerics)
    d_pad = h.shape[-1]
    inv_d = 1.0 / float(d_real)
    mu = jnp.sum(h, axis=-1, keepdims=True) * inv_d
    diff = h - mu
    if d_real != d_pad:
        lane = jax.lax.broadcasted_iota(jnp.int32, (1, d_pad), 1)
        diff_sq = jnp.where(lane < d_real, diff, 0.0)   # keep pad lanes out of var
    else:
        diff_sq = diff
    var = jnp.sum(diff_sq * diff_sq, axis=-1, keepdims=True) * inv_d
    hn = diff * jax.lax.rsqrt(var + 1e-12)
    # gamma/beta padding is 0 -> padded lanes become exactly 0 again
    hn = hn * g_ref[...] + beta_ref[...]

    # poseFinal: hn @ W2 + b2  (padded W2 rows are zero -> no spurious terms)
    out = jnp.dot(hn.astype(matmul_dtype), w2_ref[...],
                  preferred_element_type=jnp.float32)
    out = out + b2_ref[...]
    o_ref[...] = out.astype(o_ref.dtype)


def prepare_params(params, *, matmul_dtype=jnp.bfloat16):
    """Pad weights to lane-dense (multiple-of-128) shapes and pre-cast the matmul
    operands ONCE.  Call this outside the per-step hot path."""
    w1, b1, gamma, beta, w2, b2 = params
    D = w1.shape[0]
    F = w2.shape[1]
    D_pad = _round_up(D, 128)
    F_pad = _round_up(F, 128)
    w1p = jnp.pad(w1, ((0, D_pad - D), (0, D_pad - D))).astype(matmul_dtype)
    w2p = jnp.pad(w2, ((0, D_pad - D), (0, F_pad - F))).astype(matmul_dtype)
    b1p = jnp.pad(b1, (0, D_pad - D)).astype(jnp.float32).reshape(1, D_pad)
    g_p = jnp.pad(gamma, (0, D_pad - D)).astype(jnp.float32).reshape(1, D_pad)
    be_p = jnp.pad(beta, (0, D_pad - D)).astype(jnp.float32).reshape(1, D_pad)
    b2p = jnp.pad(b2, (0, F_pad - F)).astype(jnp.float32).reshape(1, F_pad)
    return (w1p, b1p, g_p, be_p, w2p, b2p)


def _vmem_capacity_bytes():
    try:
        return int(pltpu.get_tpu_info().vmem_capacity_bytes)
    except Exception:
        return 64 * 1024 * 1024          # conservative default (v7x: 64 MiB / TC)


def _vmem_estimate(tm, d_pad, f_pad, w_bytes, w_bufs):
    weights = w_bufs * (d_pad * d_pad + d_pad * f_pad) * w_bytes
    biases = w_bufs * 4 * (4 * d_pad + f_pad)
    x_tile = 2 * tm * d_pad * w_bytes    # double-buffered streamed input rows
    o_tile = 2 * tm * f_pad * 4          # double-buffered f32 output rows
    interm = 2 * tm * max(d_pad, f_pad) * 4   # live f32 h / hn values
    return weights + biases + x_tile + o_tile + interm


def output_process(hidden_states, prepared, *, out_feats, tm=None,
                   weight_buffering=1):
    """hidden_states: (T, B, D) float32 -> (B, out_feats, T) float32."""
    T, B, D = hidden_states.shape
    w1p, b1p, g_p, be_p, w2p, b2p = prepared
    D_pad = w1p.shape[0]
    F_pad = w2p.shape[1]
    F = out_feats
    matmul_dtype = w1p.dtype
    w_bytes = jnp.dtype(matmul_dtype).itemsize
    w_bufs = 1 if weight_buffering == 1 else 2

    # Generation-aware budgets: 128 MiB VMEM on v5e/v6e, 64 MiB on v7x.
    cap = _vmem_capacity_bytes()
    vmem_limit = int(min(cap * 3 // 4, 100 * 1024 * 1024))
    if tm is None:
        tm = 512 if cap >= 128 * 1024 * 1024 else 256

    M = T * B
    tm_eff = min(tm, _round_up(M, 8))
    # v7x has 2 TensorCores: make sure the 'parallel' grid axis has >= 2 steps.
    if _cdiv(M, tm_eff) < 2 and M > 8:
        tm_eff = max(8, _round_up(_cdiv(M, 2), 8))
    # Shrink the row tile if resident weights + streamed tiles would blow VMEM.
    while (_vmem_estimate(tm_eff, D_pad, F_pad, w_bytes, w_bufs) > vmem_limit
           and tm_eff > 8):
        tm_eff = max(8, _round_up(tm_eff // 2, 8))
    if _vmem_estimate(tm_eff, D_pad, F_pad, w_bytes, w_bufs) > vmem_limit:
        # TODO(synk): add a K-tiled reduction grid axis (f32 VMEM accumulator with
        # pl.when init/finalize) so latent_dim too large for resident weights still runs.
        raise NotImplementedError(
            "latent_dim/out_feats too large for the resident-weight kernel on this TPU")

    M_pad = _round_up(M, tm_eff)

    x2d = hidden_states.reshape(M, D)
    if M_pad != M or D_pad != D:
        # Pad to tile/lane-dense shape; the dtype cast is fused with the pad so the
        # streamed x tile is half the bytes (no separate HBM pass).
        x2d = jnp.pad(x2d, ((0, M_pad - M), (0, D_pad - D))).astype(matmul_dtype)
    # else: stream x untouched; the kernel casts per tile (avoids an extra HBM pass).

    # Constant-index (resident) operands: single-buffer so they don't pay 2x VMEM.
    pm = {} if weight_buffering is None else dict(
        pipeline_mode=pl.Buffered(weight_buffering))

    grid = (M_pad // tm_eff,)
    kernel = functools.partial(output_process_kernel, d_real=D)

    out2d = pl.pallas_call(
        kernel,
        out_shape=jax.ShapeDtypeStruct((M_pad, F_pad), jnp.float32),
        grid_spec=pltpu.PrefetchScalarGridSpec(
            num_scalar_prefetch=0,
            grid=grid,
            in_specs=[
                pl.BlockSpec((tm_eff, D_pad), lambda i: (i, 0)),        # x rows
                pl.BlockSpec((D_pad, D_pad), lambda i: (0, 0), **pm),   # W1 (in,out)
                pl.BlockSpec((1, D_pad), lambda i: (0, 0), **pm),       # b1
                pl.BlockSpec((1, D_pad), lambda i: (0, 0), **pm),       # LN gamma
                pl.BlockSpec((1, D_pad), lambda i: (0, 0), **pm),       # LN beta
                pl.BlockSpec((D_pad, F_pad), lambda i: (0, 0), **pm),   # W2 (in,out)
                pl.BlockSpec((1, F_pad), lambda i: (0, 0), **pm),       # b2
            ],
            out_specs=pl.BlockSpec((tm_eff, F_pad), lambda i: (i, 0)),
        ),
        compiler_params=pltpu.CompilerParams(
            dimension_semantics=("parallel",),
            vmem_limit_bytes=vmem_limit,
        ),
    )(x2d, w1p, b1p, g_p, be_p, w2p, b2p)

    out = out2d[:M, :F].reshape(T, B, F)
    # output.permute(1, 2, 0): (T, B, F) -> (B, F, T).  XLA fuses slice + transpose.
    # TODO(synk): drop this transpose if the consumer accepts (T, B, F) directly.
    return jnp.transpose(out, (1, 2, 0))


def init_params(key, latent_dim, out_feats):
    """Deterministic synthetic init matching nn.Linear / nn.LayerNorm shapes.
    nn.Linear stores weight as (out, in); we generate (in, out) directly."""
    k1, k2, k3, k4 = jax.random.split(key, 4)
    lim1 = 1.0 / jnp.sqrt(latent_dim)
    w1 = jax.random.uniform(k1, (latent_dim, latent_dim), jnp.float32, -lim1, lim1)
    b1 = jax.random.uniform(k2, (latent_dim,), jnp.float32, -lim1, lim1)
    gamma = jnp.ones((latent_dim,), jnp.float32)
    beta = jnp.zeros((latent_dim,), jnp.float32)
    w2 = jax.random.uniform(k3, (latent_dim, out_feats), jnp.float32, -lim1, lim1)
    b2 = jax.random.uniform(k4, (out_feats,), jnp.float32, -lim1, lim1)
    return (w1, b1, gamma, beta, w2, b2)


def _reference(hidden_states, params):
    """Pure-JAX reference of the PyTorch forward pass."""
    w1, b1, gamma, beta, w2, b2 = params
    h = hidden_states @ w1 + b1
    h = jax.nn.gelu(h, approximate=False)
    mu = h.mean(-1, keepdims=True)
    var = ((h - mu) ** 2).mean(-1, keepdims=True)
    h = (h - mu) / jnp.sqrt(var + 1e-12)
    h = h * gamma + beta
    out = h @ w2 + b2
    return jnp.transpose(out, (1, 2, 0))


def _run(hidden_states, prepared, out_feats):
    """Run the kernel; fall back to default (double-buffered) weight specs if this
    jax version rejects single-buffered pl.Buffered(1) block specs."""
    try:
        fn = jax.jit(functools.partial(output_process, out_feats=out_feats,
                                       weight_buffering=1))
        out = fn(hidden_states, prepared)
        jax.block_until_ready(out)
        return out
    except Exception:
        fn = jax.jit(functools.partial(output_process, out_feats=out_feats,
                                       weight_buffering=None))
        out = fn(hidden_states, prepared)
        jax.block_until_ready(out)
        return out


if __name__ == "__main__":
    # Small shapes implied by the module: (seq=T, batch=B, latent_dim) -> out_feats
    T, B, latent_dim, out_feats = 8, 2, 32, 16

    key = jax.random.PRNGKey(0)
    kx, kp = jax.random.split(key)
    hidden_states = jax.random.normal(kx, (T, B, latent_dim), jnp.float32)
    params = init_params(kp, latent_dim, out_feats)
    ref = _reference(hidden_states, params)

    # Fast path (default): bf16 matmul operands (MXU-native), f32 accumulation.
    prepared_bf16 = prepare_params(params, matmul_dtype=jnp.bfloat16)
    out = _run(hidden_states, prepared_bf16, out_feats)
    assert out.shape == (B, out_feats, T), out.shape
    assert jnp.allclose(out, ref, rtol=6e-2, atol=6e-2), \
        float(jnp.max(jnp.abs(out - ref)))

    # Parity path: f32 matmul operands, tighter check against the f32 reference.
    prepared_f32 = prepare_params(params, matmul_dtype=jnp.float32)
    out32 = _run(hidden_states, prepared_f32, out_feats)
    assert out32.shape == (B, out_feats, T), out32.shape
    assert jnp.allclose(out32, ref, rtol=2e-2, atol=2e-2), \
        float(jnp.max(jnp.abs(out32 - ref)))

    print("KERNEL_OK")
</pallas_src>

<mosaic_0001>
module attributes {stable_mosaic.version = 11 : i64} {
  func.func @output_process_kernel(%arg0: i32, %arg1: memref<8x128xbf16, #tpu.memory_space<vmem>>, %arg2: memref<128x128xbf16, #tpu.memory_space<vmem>>, %arg3: memref<1x128xf32, #tpu.memory_space<vmem>>, %arg4: memref<1x128xf32, #tpu.memory_space<vmem>>, %arg5: memref<1x128xf32, #tpu.memory_space<vmem>>, %arg6: memref<128x128xbf16, #tpu.memory_space<vmem>>, %arg7: memref<1x128xf32, #tpu.memory_space<vmem>>, %arg8: memref<8x128xf32, #tpu.memory_space<vmem>>) attributes {dimension_semantics = [#tpu.dimension_semantics<parallel>], iteration_bounds = array<i64: 2>, scalar_prefetch = 0 : i64, scratch_operands = 0 : i64, tpu.core_type = #tpu.core_type<tc>, window_params = [{transform_indices = @transform_0, window_bounds = array<i64: 8, 128>}, {pipeline_mode = #tpu.pipeline_mode<synchronous>, transform_indices = @transform_1, window_bounds = array<i64: 128, 128>}, {pipeline_mode = #tpu.pipeline_mode<synchronous>, transform_indices = @transform_2, window_bounds = array<i64: 1, 128>}, {pipeline_mode = #tpu.pipeline_mode<synchronous>, transform_indices = @transform_3, window_bounds = array<i64: 1, 128>}, {pipeline_mode = #tpu.pipeline_mode<synchronous>, transform_indices = @transform_4, window_bounds = array<i64: 1, 128>}, {pipeline_mode = #tpu.pipeline_mode<synchronous>, transform_indices = @transform_5, window_bounds = array<i64: 128, 128>}, {pipeline_mode = #tpu.pipeline_mode<synchronous>, transform_indices = @transform_6, window_bounds = array<i64: 1, 128>}, {transform_indices = @transform_7, window_bounds = array<i64: 8, 128>}]} {
    %c0 = arith.constant 0 : index
    %c0_0 = arith.constant 0 : index
    %0 = vector.load %arg1[%c0, %c0_0] : memref<8x128xbf16, #tpu.memory_space<vmem>>, vector<8x128xbf16>
    %c0_1 = arith.constant 0 : index
    %c0_2 = arith.constant 0 : index
    %1 = vector.load %arg2[%c0_1, %c0_2] : memref<128x128xbf16, #tpu.memory_space<vmem>>, vector<128x128xbf16>
    %cst = arith.constant dense<0.000000e+00> : vector<8x128xf32>
    %2 = tpu.matmul %0, %1, %cst {dimension_numbers = #tpu.dot_dimension_numbers<[1], [0], [0], [1], [0, 0, 1, 1], [], []>} : vector<8x128xbf16>, vector<128x128xbf16>, vector<8x128xf32> -> vector<8x128xf32>
    %c0_3 = arith.constant 0 : index
    %c0_4 = arith.constant 0 : index
    %3 = vector.load %arg3[%c0_3, %c0_4] : memref<1x128xf32, #tpu.memory_space<vmem>>, vector<1x128xf32>
    %4 = vector.broadcast %3 : vector<1x128xf32> to vector<8x128xf32>
    %5 = arith.addf %2, %4 : vector<8x128xf32>
    %cst_5 = arith.constant 5.000000e-01 : f32
    %6 = vector.broadcast %cst_5 : f32 to vector<8x128xf32>
    %7 = arith.mulf %6, %5 : vector<8x128xf32>
    %cst_6 = arith.constant 0.707106769 : f32
    %8 = vector.broadcast %cst_6 : f32 to vector<8x128xf32>
    %9 = arith.mulf %5, %8 : vector<8x128xf32>
    %cst_7 = arith.constant 0.000000e+00 : f32
    %10 = vector.broadcast %cst_7 : f32 to vector<8x128xf32>
    %11 = arith.cmpf olt, %9, %10 : vector<8x128xf32>
    %cst_8 = arith.constant -1.000000e+00 : f32
    %cst_9 = arith.constant 1.000000e+00 : f32
    %12 = vector.broadcast %cst_8 : f32 to vector<8x128xf32>
    %13 = vector.broadcast %cst_9 : f32 to vector<8x128xf32>
    %14 = arith.select %11, %12, %13 : vector<8x128xi1>, vector<8x128xf32>
    %15 = math.absf %9 : vector<8x128xf32>
    %cst_10 = arith.constant 0.327591091 : f32
    %16 = vector.broadcast %cst_10 : f32 to vector<8x128xf32>
    %17 = arith.mulf %16, %15 : vector<8x128xf32>
    %cst_11 = arith.constant 1.000000e+00 : f32
    %18 = vector.broadcast %cst_11 : f32 to vector<8x128xf32>
    %19 = arith.addf %18, %17 : vector<8x128xf32>
    %20 = tpu.reciprocal %19 {approx = true} : vector<8x128xf32> -> vector<8x128xf32>
    %21 = arith.mulf %19, %20 : vector<8x128xf32>
    %cst_12 = arith.constant 2.000000e+00 : f32
    %22 = vector.broadcast %cst_12 : f32 to vector<8x128xf32>
    %23 = arith.subf %22, %21 : vector<8x128xf32>
    %24 = arith.mulf %20, %23 : vector<8x128xf32>
    %cst_13 = arith.constant 1.06140542 : f32
    %25 = vector.broadcast %cst_13 : f32 to vector<8x128xf32>
    %26 = arith.mulf %25, %24 : vector<8x128xf32>
    %cst_14 = arith.constant -1.45315206 : f32
    %27 = vector.broadcast %cst_14 : f32 to vector<8x128xf32>
    %28 = arith.addf %26, %27 : vector<8x128xf32>
    %29 = arith.mulf %28, %24 : vector<8x128xf32>
    %cst_15 = arith.constant 1.42141378 : f32
    %30 = vector.broadcast %cst_15 : f32 to vector<8x128xf32>
    %31 = arith.addf %29, %30 : vector<8x128xf32>
    %32 = arith.mulf %31, %24 : vector<8x128xf32>
    %cst_16 = arith.constant -0.284496725 : f32
    %33 = vector.broadcast %cst_16 : f32 to vector<8x128xf32>
    %34 = arith.addf %32, %33 : vector<8x128xf32>
    %35 = arith.mulf %34, %24 : vector<8x128xf32>
    %cst_17 = arith.constant 0.254829586 : f32
    %36 = vector.broadcast %cst_17 : f32 to vector<8x128xf32>
    %37 = arith.addf %35, %36 : vector<8x128xf32>
    %38 = arith.mulf %37, %24 : vector<8x128xf32>
    %cst_18 = arith.constant 0.000000e+00 : f32
    %39 = vector.broadcast %cst_18 : f32 to vector<8x128xf32>
    %40 = arith.subf %39, %15 : vector<8x128xf32>
    %41 = arith.mulf %40, %15 : vector<8x128xf32>
    %42 = math.exp %41 : vector<8x128xf32>
    %43 = arith.mulf %38, %42 : vector<8x128xf32>
    %cst_19 = arith.constant 1.000000e+00 : f32
    %44 = vector.broadcast %cst_19 : f32 to vector<8x128xf32>
    %45 = arith.subf %44, %43 : vector<8x128xf32>
    %46 = arith.mulf %14, %45 : vector<8x128xf32>
    %cst_20 = arith.constant 1.000000e+00 : f32
    %47 = vector.broadcast %cst_20 : f32 to vector<8x128xf32>
    %48 = arith.addf %47, %46 : vector<8x128xf32>
    %49 = arith.mulf %7, %48 : vector<8x128xf32>
    %cst_21 = arith.constant dense<0.000000e+00> : vector<8xf32>
    %50 = vector.multi_reduction <add>, %49, %cst_21 [1] : vector<8x128xf32> to vector<8xf32>
    %51 = vector.shape_cast %50 : vector<8xf32> to vector<8x1xf32>
    %cst_22 = arith.constant 3.125000e-02 : f32
    %52 = vector.broadcast %cst_22 : f32 to vector<8x1xf32>
    %53 = arith.mulf %51, %52 : vector<8x1xf32>
    %54 = vector.broadcast %53 : vector<8x1xf32> to vector<8x128xf32>
    %55 = arith.subf %49, %54 : vector<8x128xf32>
    %56 = tpu.iota {dimensions = array<i32: 1>} : vector<1x128xi32>
    %c32_i32 = arith.constant 32 : i32
    %57 = vector.broadcast %c32_i32 : i32 to vector<1x128xi32>
    %58 = arith.cmpi slt, %56, %57 : vector<1x128xi32>
    %cst_23 = arith.constant 0.000000e+00 : f32
    %59 = vector.shape_cast %58 : vector<1x128xi1> to vector<1x128xi1>
    %60 = vector.broadcast %59 : vector<1x128xi1> to vector<8x128xi1>
    %61 = vector.broadcast %cst_23 : f32 to vector<8x128xf32>
    %62 = arith.select %60, %55, %61 : vector<8x128xi1>, vector<8x128xf32>
    %63 = arith.mulf %62, %62 : vector<8x128xf32>
    %cst_24 = arith.constant dense<0.000000e+00> : vector<8xf32>
    %64 = vector.multi_reduction <add>, %63, %cst_24 [1] : vector<8x128xf32> to vector<8xf32>
    %65 = vector.shape_cast %64 : vector<8xf32> to vector<8x1xf32>
    %cst_25 = arith.constant 3.125000e-02 : f32
    %66 = vector.broadcast %cst_25 : f32 to vector<8x1xf32>
    %67 = arith.mulf %65, %66 : vector<8x1xf32>
    %cst_26 = arith.constant 9.99999996E-13 : f32
    %68 = vector.broadcast %cst_26 : f32 to vector<8x1xf32>
    %69 = arith.addf %67, %68 : vector<8x1xf32>
    %70 = math.rsqrt %69 : vector<8x1xf32>
    %71 = vector.broadcast %70 : vector<8x1xf32> to vector<8x128xf32>
    %72 = arith.mulf %55, %71 : vector<8x128xf32>
    %c0_27 = arith.constant 0 : index
    %c0_28 = arith.constant 0 : index
    %73 = vector.load %arg4[%c0_27, %c0_28] : memref<1x128xf32, #tpu.memory_space<vmem>>, vector<1x128xf32>
    %74 = vector.broadcast %73 : vector<1x128xf32> to vector<8x128xf32>
    %75 = arith.mulf %72, %74 : vector<8x128xf32>
    %c0_29 = arith.constant 0 : index
    %c0_30 = arith.constant 0 : index
    %76 = vector.load %arg5[%c0_29, %c0_30] : memref<1x128xf32, #tpu.memory_space<vmem>>, vector<1x128xf32>
    %77 = vector.broadcast %76 : vector<1x128xf32> to vector<8x128xf32>
    %78 = arith.addf %75, %77 : vector<8x128xf32>
    %79 = arith.truncf %78 : vector<8x128xf32> to vector<8x128xbf16>
    %c0_31 = arith.constant 0 : index
    %c0_32 = arith.constant 0 : index
    %80 = vector.load %arg6[%c0_31, %c0_32] : memref<128x128xbf16, #tpu.memory_space<vmem>>, vector<128x128xbf16>
    %cst_33 = arith.constant dense<0.000000e+00> : vector<8x128xf32>
    %81 = tpu.matmul %79, %80, %cst_33 {dimension_numbers = #tpu.dot_dimension_numbers<[1], [0], [0], [1], [0, 0, 1, 1], [], []>} : vector<8x128xbf16>, vector<128x128xbf16>, vector<8x128xf32> -> vector<8x128xf32>
    %c0_34 = arith.constant 0 : index
    %c0_35 = arith.constant 0 : index
    %82 = vector.load %arg7[%c0_34, %c0_35] : memref<1x128xf32, #tpu.memory_space<vmem>>, vector<1x128xf32>
    %83 = vector.broadcast %82 : vector<1x128xf32> to vector<8x128xf32>
    %84 = arith.addf %81, %83 : vector<8x128xf32>
    %c0_36 = arith.constant 0 : index
    %c0_37 = arith.constant 0 : index
    %85 = vector.load %arg8[%c0_36, %c0_37] : memref<8x128xf32, #tpu.memory_space<vmem>>, vector<8x128xf32>
    tpu.vector_store %arg8[%c0_36, %c0_37], %84 {strides = array<i32>} : memref<8x128xf32, #tpu.memory_space<vmem>>, vector<8x128xf32>,
    return
  }
  func.func @transform_0(%arg0: i32) -> (i32, i32) {
    %c0_i32 = arith.constant 0 : i32
    %c0_i32_0 = arith.constant 0 : i32
    return %arg0, %c0_i32 : i32, i32
  }
  func.func @transform_1(%arg0: i32) -> (i32, i32) {
    %c0_i32 = arith.constant 0 : i32
    %c0_i32_0 = arith.constant 0 : i32
    %c0_i32_1 = arith.constant 0 : i32
    return %c0_i32, %c0_i32_0 : i32, i32
  }
  func.func @transform_2(%arg0: i32) -> (i32, i32) {
    %c0_i32 = arith.constant 0 : i32
    %c0_i32_0 = arith.constant 0 : i32
    %c0_i32_1 = arith.constant 0 : i32
    return %c0_i32, %c0_i32_0 : i32, i32
  }
  func.func @transform_3(%arg0: i32) -> (i32, i32) {
    %c0_i32 = arith.constant 0 : i32
    %c0_i32_0 = arith.constant 0 : i32
    %c0_i32_1 = arith.constant 0 : i32
    return %c0_i32, %c0_i32_0 : i32, i32
  }
  func.func @transform_4(%arg0: i32) -> (i32, i32) {
    %c0_i32 = arith.constant 0 : i32
    %c0_i32_0 = arith.constant 0 : i32
    %c0_i32_1 = arith.constant 0 : i32
    return %c0_i32, %c0_i32_0 : i32, i32
  }
  func.func @transform_5(%arg0: i32) -> (i32, i32) {
    %c0_i32 = arith.constant 0 : i32
    %c0_i32_0 = arith.constant 0 : i32
    %c0_i32_1 = arith.constant 0 : i32
    return %c0_i32, %c0_i32_0 : i32, i32
  }
  func.func @transform_6(%arg0: i32) -> (i32, i32) {
    %c0_i32 = arith.constant 0 : i32
    %c0_i32_0 = arith.constant 0 : i32
    %c0_i32_1 = arith.constant 0 : i32
    return %c0_i32, %c0_i32_0 : i32, i32
  }
  func.func @transform_7(%arg0: i32) -> (i32, i32) {
    %c0_i32 = arith.constant 0 : i32
    %c0_i32_0 = arith.constant 0 : i32
    return %arg0, %c0_i32 : i32, i32
  }
}

module attributes {stable_mosaic.version = 11 : i64} {
  func.func @output_process_kernel(%arg0: i32, %arg1: memref<8x128xbf16, #tpu.memory_space<vmem>>, %arg2: memref<128x128xbf16, #tpu.memory_space<vmem>>, %arg3: memref<1x128xf32, #tpu.memory_space<vmem>>, %arg4: memref<1x128xf32, #tpu.memory_space<vmem>>, %arg5: memref<1x128xf32, #tpu.memory_space<vmem>>, %arg6: memref<128x128xbf16, #tpu.memory_space<vmem>>, %arg7: memref<1x128xf32, #tpu.memory_space<vmem>>, %arg8: memref<8x128xf32, #tpu.memory_space<vmem>>) attributes {dimension_semantics = [#tpu.dimension_semantics<parallel>], iteration_bounds = array<i64: 2>, scalar_prefetch = 0 : i64, scratch_operands = 0 : i64, tpu.core_type = #tpu.core_type<tc>, window_params = [{transform_indices = @transform_0, window_bounds = array<i64: 8, 128>}, {pipeline_mode = #tpu.pipeline_mode<synchronous>, transform_indices = @transform_1, window_bounds = array<i64: 128, 128>}, {pipeline_mode = #tpu.pipeline_mode<synchronous>, transform_indices = @transform_2, window_bounds = array<i64: 1, 128>}, {pipeline_mode = #tpu.pipeline_mode<synchronous>, transform_indices = @transform_3, window_bounds = array<i64: 1, 128>}, {pipeline_mode = #tpu.pipeline_mode<synchronous>, transform_indices = @transform_4, window_bounds = array<i64: 1, 128>}, {pipeline_mode = #tpu.pipeline_mode<synchronous>, transform_indices = @transform_5, window_bounds = array<i64: 128, 128>}, {pipeline_mode = #tpu.pipeline_mode<synchronous>, transform_indices = @transform_6, window_bounds = array<i64: 1, 128>}, {transform_indices = @transform_7, window_bounds = array<i64: 8, 128>}]} {
    %c0 = arith.constant 0 : index
    %c0_0 = arith.constant 0 : index
    %0 = vector.load %arg1[%c0, %c0_0] : memref<8x128xbf16, #tpu.memory_space<vmem>>, vector<8x128xbf16>
    %c0_1 = arith.constant 0 : index
    %c0_2 = arith.constant 0 : index
    %1 = vector.load %arg2[%c0_1, %c0_2] : memref<128x128xbf16, #tpu.memory_space<vmem>>, vector<128x128xbf16>
    %cst = arith.constant dense<0.000000e+00> : vector<8x128xf32>
    %2 = tpu.matmul %0, %1, %cst {dimension_numbers = #tpu.dot_dimension_numbers<[1], [0], [0], [1], [0, 0, 1, 1], [], []>} : vector<8x128xbf16>, vector<128x128xbf16>, vector<8x128xf32> -> vector<8x128xf32>
    %c0_3 = arith.constant 0 : index
    %c0_4 = arith.constant 0 : index
    %3 = vector.load %arg3[%c0_3, %c0_4] : memref<1x128xf32, #tpu.memory_space<vmem>>, vector<1x128xf32>
    %4 = vector.broadcast %3 : vector<1x128xf32> to vector<8x128xf32>
    %5 = arith.addf %2, %4 : vector<8x128xf32>
    %cst_5 = arith.constant 5.000000e-01 : f32
    %6 = vector.broadcast %cst_5 : f32 to vector<8x128xf32>
    %7 = arith.mulf %6, %5 : vector<8x128xf32>
    %cst_6 = arith.constant 0.707106769 : f32
    %8 = vector.broadcast %cst_6 : f32 to vector<8x128xf32>
    %9 = arith.mulf %5, %8 : vector<8x128xf32>
    %cst_7 = arith.constant 0.000000e+00 : f32
    %10 = vector.broadcast %cst_7 : f32 to vector<8x128xf32>
    %11 = arith.cmpf olt, %9, %10 : vector<8x128xf32>
    %cst_8 = arith.constant -1.000000e+00 : f32
    %cst_9 = arith.constant 1.000000e+00 : f32
    %12 = vector.broadcast %cst_8 : f32 to vector<8x128xf32>
    %13 = vector.broadcast %cst_9 : f32 to vector<8x128xf32>
    %14 = arith.select %11, %12, %13 : vector<8x128xi1>, vector<8x128xf32>
    %15 = math.absf %9 : vector<8x128xf32>
    %cst_10 = arith.constant 0.327591091 : f32
    %16 = vector.broadcast %cst_10 : f32 to vector<8x128xf32>
    %17 = arith.mulf %16, %15 : vector<8x128xf32>
    %cst_11 = arith.constant 1.000000e+00 : f32
    %18 = vector.broadcast %cst_11 : f32 to vector<8x128xf32>
    %19 = arith.addf %18, %17 : vector<8x128xf32>
    %20 = tpu.reciprocal %19 {approx = true} : vector<8x128xf32> -> vector<8x128xf32>
    %21 = arith.mulf %19, %20 : vector<8x128xf32>
    %cst_12 = arith.constant 2.000000e+00 : f32
    %22 = vector.broadcast %cst_12 : f32 to vector<8x128xf32>
    %23 = arith.subf %22, %21 : vector<8x128xf32>
    %24 = arith.mulf %20, %23 : vector<8x128xf32>
    %cst_13 = arith.constant 1.06140542 : f32
    %25 = vector.broadcast %cst_13 : f32 to vector<8x128xf32>
    %26 = arith.mulf %25, %24 : vector<8x128xf32>
    %cst_14 = arith.constant -1.45315206 : f32
    %27 = vector.broadcast %cst_14 : f32 to vector<8x128xf32>
    %28 = arith.addf %26, %27 : vector<8x128xf32>
    %29 = arith.mulf %28, %24 : vector<8x128xf32>
    %cst_15 = arith.constant 1.42141378 : f32
    %30 = vector.broadcast %cst_15 : f32 to vector<8x128xf32>
    %31 = arith.addf %29, %30 : vector<8x128xf32>
    %32 = arith.mulf %31, %24 : vector<8x128xf32>
    %cst_16 = arith.constant -0.284496725 : f32
    %33 = vector.broadcast %cst_16 : f32 to vector<8x128xf32>
    %34 = arith.addf %32, %33 : vector<8x128xf32>
    %35 = arith.mulf %34, %24 : vector<8x128xf32>
    %cst_17 = arith.constant 0.254829586 : f32
    %36 = vector.broadcast %cst_17 : f32 to vector<8x128xf32>
    %37 = arith.addf %35, %36 : vector<8x128xf32>
    %38 = arith.mulf %37, %24 : vector<8x128xf32>
    %cst_18 = arith.constant 0.000000e+00 : f32
    %39 = vector.broadcast %cst_18 : f32 to vector<8x128xf32>
    %40 = arith.subf %39, %15 : vector<8x128xf32>
    %41 = arith.mulf %40, %15 : vector<8x128xf32>
    %42 = math.exp %41 : vector<8x128xf32>
    %43 = arith.mulf %38, %42 : vector<8x128xf32>
    %cst_19 = arith.constant 1.000000e+00 : f32
    %44 = vector.broadcast %cst_19 : f32 to vector<8x128xf32>
    %45 = arith.subf %44, %43 : vector<8x128xf32>
    %46 = arith.mulf %14, %45 : vector<8x128xf32>
    %cst_20 = arith.constant 1.000000e+00 : f32
    %47 = vector.broadcast %cst_20 : f32 to vector<8x128xf32>
    %48 = arith.addf %47, %46 : vector<8x128xf32>
    %49 = arith.mulf %7, %48 : vector<8x128xf32>
    %cst_21 = arith.constant dense<0.000000e+00> : vector<8xf32>
    %50 = vector.multi_reduction <add>, %49, %cst_21 [1] : vector<8x128xf32> to vector<8xf32>
    %51 = vector.shape_cast %50 : vector<8xf32> to vector<8x1xf32>
    %cst_22 = arith.constant 3.125000e-02 : f32
    %52 = vector.broadcast %cst_22 : f32 to vector<8x1xf32>
    %53 = arith.mulf %51, %52 : vector<8x1xf32>
    %54 = vector.broadcast %53 : vector<8x1xf32> to vector<8x128xf32>
    %55 = arith.subf %49, %54 : vector<8x128xf32>
    %56 = tpu.iota {dimensions = array<i32: 1>} : vector<1x128xi32>
    %c32_i32 = arith.constant 32 : i32
    %57 = vector.broadcast %c32_i32 : i32 to vector<1x128xi32>
    %58 = arith.cmpi slt, %56, %57 : vector<1x128xi32>
    %cst_23 = arith.constant 0.000000e+00 : f32
    %59 = vector.shape_cast %58 : vector<1x128xi1> to vector<1x128xi1>
    %60 = vector.broadcast %59 : vector<1x128xi1> to vector<8x128xi1>
    %61 = vector.broadcast %cst_23 : f32 to vector<8x128xf32>
    %62 = arith.select %60, %55, %61 : vector<8x128xi1>, vector<8x128xf32>
    %63 = arith.mulf %62, %62 : vector<8x128xf32>
    %cst_24 = arith.constant dense<0.000000e+00> : vector<8xf32>
    %64 = vector.multi_reduction <add>, %63, %cst_24 [1] : vector<8x128xf32> to vector<8xf32>
    %65 = vector.shape_cast %64 : vector<8xf32> to vector<8x1xf32>
    %cst_25 = arith.constant 3.125000e-02 : f32
    %66 = vector.broadcast %cst_25 : f32 to vector<8x1xf32>
    %67 = arith.mulf %65, %66 : vector<8x1xf32>
    %cst_26 = arith.constant 9.99999996E-13 : f32
    %68 = vector.broadcast %cst_26 : f32 to vector<8x1xf32>
    %69 = arith.addf %67, %68 : vector<8x1xf32>
    %70 = math.rsqrt %69 : vector<8x1xf32>
    %71 = vector.broadcast %70 : vector<8x1xf32> to vector<8x128xf32>
    %72 = arith.mulf %55, %71 : vector<8x128xf32>
    %c0_27 = arith.constant 0 : index
    %c0_28 = arith.constant 0 : index
    %73 = vector.load %arg4[%c0_27, %c0_28] : memref<1x128xf32, #tpu.memory_space<vmem>>, vector<1x128xf32>
    %74 = vector.broadcast %73 : vector<1x128xf32> to vector<8x128xf32>
    %75 = arith.mulf %72, %74 : vector<8x128xf32>
    %c0_29 = arith.constant 0 : index
    %c0_30 = arith.constant 0 : index
    %76 = vector.load %arg5[%c0_29, %c0_30] : memref<1x128xf32, #tpu.memory_space<vmem>>, vector<1x128xf32>
    %77 = vector.broadcast %76 : vector<1x128xf32> to vector<8x128xf32>
    %78 = arith.addf %75, %77 : vector<8x128xf32>
    %79 = arith.truncf %78 : vector<8x128xf32> to vector<8x128xbf16>
    %c0_31 = arith.constant 0 : index
    %c0_32 = arith.constant 0 : index
    %80 = vector.load %arg6[%c0_31, %c0_32] : memref<128x128xbf16, #tpu.memory_space<vmem>>, vector<128x128xbf16>
    %cst_33 = arith.constant dense<0.000000e+00> : vector<8x128xf32>
    %81 = tpu.matmul %79, %80, %cst_33 {dimension_numbers = #tpu.dot_dimension_numbers<[1], [0], [0], [1], [0, 0, 1, 1], [], []>} : vector<8x128xbf16>, vector<128x128xbf16>, vector<8x128xf32> -> vector<8x128xf32>
    %c0_34 = arith.constant 0 : index
    %c0_35 = arith.constant 0 : index
    %82 = vector.load %arg7[%c0_34, %c0_35] : memref<1x128xf32, #tpu.memory_space<vmem>>, vector<1x128xf32>
    %83 = vector.broadcast %82 : vector<1x128xf32> to vector<8x128xf32>
    %84 = arith.addf %81, %83 : vector<8x128xf32>
    %c0_36 = arith.constant 0 : index
    %c0_37 = arith.constant 0 : index
    %85 = vector.load %arg8[%c0_36, %c0_37] : memref<8x128xf32, #tpu.memory_space<vmem>>, vector<8x128xf32>
    tpu.vector_store %arg8[%c0_36, %c0_37], %84 {strides = array<i32>} : memref<8x128xf32, #tpu.memory_space<vmem>>, vector<8x128xf32>,
    return
  }
  func.func @transform_0(%arg0: i32) -> (i32, i32) {
    %c0_i32 = arith.constant 0 : i32
    %c0_i32_0 = arith.constant 0 : i32
    return %arg0, %c0_i32 : i32, i32
  }
  func.func @transform_1(%arg0: i32) -> (i32, i32) {
    %c0_i32 = arith.constant 0 : i32
    %c0_i32_0 = arith.constant 0 : i32
    %c0_i32_1 = arith.constant 0 : i32
    return %c0_i32, %c0_i32_0 : i32, i32
  }
  func.func @transform_2(%arg0: i32) -> (i32, i32) {
    %c0_i32 = arith.constant 0 : i32
    %c0_i32_0 = arith.constant 0 : i32
    %c0_i32_1 = arith.constant 0 : i32
    return %c0_i32, %c0_i32_0 : i32, i32
  }
  func.func @transform_3(%arg0: i32) -> (i32, i32) {
    %c0_i32 = arith.constant 0 : i32
    %c0_i32_0 = arith.constant 0 : i32
    %c0_i32_1 = arith.constant 0 : i32
    return %c0_i32, %c0_i32_0 : i32, i32
  }
  func.func @transform_4(%arg0: i32) -> (i32, i32) {
    %c0_i32 = arith.constant 0 : i32
    %c0_i32_0 = arith.constant 0 : i32
    %c0_i32_1 = arith.constant 0 : i32
    return %c0_i32, %c0_i32_0 : i32, i32
  }
  func.func @transform_5(%arg0: i32) -> (i32, i32) {
    %c0_i32 = arith.constant 0 : i32
    %c0_i32_0 = arith.constant 0 : i32
    %c0_i32_1 = arith.constant 0 : i32
    return %c0_i32, %c0_i32_0 : i32, i32
  }
  func.func @transform_6(%arg0: i32) -> (i32, i32) {
    %c0_i32 = arith.constant 0 : i32
    %c0_i32_0 = arith.constant 0 : i32
    %c0_i32_1 = arith.constant 0 : i32
    return %c0_i32, %c0_i32_0 : i32, i32
  }
  func.func @transform_7(%arg0: i32) -> (i32, i32) {
    %c0_i32 = arith.constant 0 : i32
    %c0_i32_0 = arith.constant 0 : i32
    return %arg0, %c0_i32 : i32, i32
  }
}

</mosaic_0001>

<bundles_post_ra>
// kernel: output_process.1
= control target key start
LH: loop header
LB: loop body
LE: loop exit
PB: predicated region body
PF: predicated region fallthrough
CT: control target
= control target key end

     0   :  { %12 = vsyncpa [#allocation3], 0  ;;  %s1025_s0 = inlined_call_operand.vmem [shape: bf16[16,128], index: 0, kind: input, shape index: {}]   ;;  %s1026_s1 = inlined_call_operand.hbm [shape: bf16[128,128], index: 1, kind: input, shape index: {}]   ;;  %s1027_s2 = inlined_call_operand.vmem [shape: f32[1,128], index: 2, kind: input, shape index: {}]   ;;  %s1028_s3 = inlined_call_operand.vmem [shape: f32[1,128], index: 3, kind: input, shape index: {}]   ;;  %s1029_s4 = inlined_call_operand.vmem [shape: f32[1,128], index: 4, kind: input, shape index: {}]   ;;  %s1030_s5 = inlined_call_operand.hbm [shape: bf16[128,128], index: 5, kind: input, shape index: {}]   ;;  %s1031_s6 = inlined_call_operand.vmem [shape: f32[1,128], index: 6, kind: input, shape index: {}]   ;;  %s1032_s7 = inlined_call_operand.vmem [shape: f32[16,128], index: 7, kind: output, shape index: {}]  }
   0x1   :  { %13 = vsyncpa [#allocation5], 0  ;;  %s929_s24 = smov 0  }
   0x2 LB: > { %s935_s25 = sadd.s32 4294967295, %s880_s24   ;;  %p669_p0 = scmp.ge.s32.totalorder %s880_s24, 1  ;;  %s880_s24 = sphi %s929_s24, %s19_s24  }
   0x3   : > { %p202_p1 = scmp.lt.s32.totalorder %s880_s24, 3  ;;  %s882_s26 = smov [#allocation2]  }
   0x4   : > { %s214_s27 = sshll.u32 %s882_s26, 4  ;;  %p773_p3 = scmp.eq.s32.totalorder %s935_s25, 0  ;;  %s215_s27 = int_to_ptr.vmem [resolvable:$true] %s214_s27 }
   0x5   : > { %p939_p2 = pnand %p669_p0, %p202_p1  ;;  %s883_s29 = smov [#allocation4]  }
   0x6   : > { %s236_s30 = sshll.u32 %s883_s29, 4  ;;  %s825_s9 = scalar_lea.vmem %s215_s27, 1024  ;;  %s237_s30 = int_to_ptr.vmem [resolvable:$true] %s236_s30 }
   0x7   : > { %p766_p4 = pneg %p939_p2  ;;  %p826_p7 = scmp.ne.s32.totalorder %s215_s27, %s825_s9 }
   0x8   : > { %p833_p10 = scmp.lt.s32.totalorder %s215_s27, %s215_s27  ;;  %p834_p11 = scmp.lt.s32.totalorder %s825_s9, %s825_s9 }
   0x9   : > { %p948_p5 = pnand %p773_p3, %p766_p4 }
   0xa   : > { %p835_p12 = por %p834_p11, %p833_p10 }
   0xb   : > { %p816_p6 = pneg %p948_p5 }
   0xd   : > { %p828_p8 = pnand %p826_p7, %p816_p6 }
   0xf   : > { %p829_p9 = pneg %p828_p8 }
  0x11   : > { %p836_p13 = pnand %p835_p12, %p829_p9 }
  0x13   : > { %839 = shalt.err (!%p836_p13)
}
  0x14   : > { %s884_s10 = smov 64   ;;  %s885_s11 = smov 4  }
  0x15   : > { %769 = dma.hbm_to_vmem [thread:$0]  (!%p948_p5), %s1026_s1, 1024, %s215_s27, [#allocation3], %s884_s10, %s884_s10, %s885_s11  }
  0x16   : > { %s851_s14 = scalar_lea.vmem %s237_s30, 1024  ;;  %p859_p7 = scmp.lt.s32.totalorder %s237_s30, %s237_s30 }
  0x17   : > { %p852_p0 = scmp.ne.s32.totalorder %s237_s30, %s851_s14  ;;  %p860_p8 = scmp.lt.s32.totalorder %s851_s14, %s851_s14 }
  0x19   : > { %p854_p1 = pnand %p852_p0, %p816_p6  ;;  %p861_p10 = por %p860_p8, %p859_p7 }
  0x1b   : > { %p855_p4 = pneg %p854_p1 }
  0x1d   : > { %p862_p9 = pnand %p861_p10, %p855_p4 }
  0x1f   : > { %865 = shalt.err (!%p862_p9)
}
  0x20   : > { %772 = dma.hbm_to_vmem [thread:$0]  (!%p948_p5), %s1030_s5, 1024, %s237_s30, [#allocation5], %s884_s10, %s884_s10, %s885_s11  }
  0x21   : > { %262 = sbr.rel (%p939_p2) target bundleno = 834 (0x342), region = 48 }
  0x26   : > { %871 = dma.done.wait (%p773_p3), [#allocation3], 1024  }
  0x27   : > { %873 = vsyncadd (%p773_p3), [#allocation3], 4294966272 }
  0x28   : > { %875 = dma.done.wait (%p773_p3), [#allocation5], 1024  }
  0x29   : > { %877 = vsyncadd (%p773_p3), [#allocation5], 4294966272  ;;  %v886_v0 = vmov 0.0   ;;  %vm887_vm0 = vmmov 0   ;;  %v792_v1 = vld [vmem:[#allocation2 + $0x38] sm:$0xff]   ;;  %v793_v2 = vld [vmem:[#allocation2 + $0x30] sm:$0xff]   ;;  %v450_v47 = vlaneseq }
  0x2a   : > { %718 = vmatprep.subr.bf16.mxu0 %v886_v0  ;;  %734 = vmatprep.mubr.msk.bf16.mxu0 %vm887_vm0, %v886_v0  ;;  %v794_v3 = vld [vmem:[#allocation2 + $0x28] sm:$0xff]   ;;  %v795_v4 = vld [vmem:[#allocation2 + $0x20] sm:$0xff]   ;;  %v796_v5 = vld [vmem:[#allocation2 + $0x18] sm:$0xff]   ;;  %p296_p2 = scmp.lt.s32.totalorder %s935_s25, 1  ;;  %v888_v39 = vmov 1.0  }
  0x2b   : > { %738 = vmatprep.subr.bf16.mxu1 %v886_v0  ;;  %754 = vmatprep.mubr.msk.bf16.mxu1 %vm887_vm0, %v886_v0  ;;  %v797_v6 = vld [vmem:[#allocation2 + $0x10] sm:$0xff]   ;;  %v798_v7 = vld [vmem:[#allocation2 + $0x8] sm:$0xff]   ;;  %v799_v8 = vld [vmem:[#allocation2] sm:$0xff]   ;;  %v451_v48 = vand.u32 127, %v450_v47 }
  0x2c   : > { %719 = vmatpush3.bf16.msra.mxu0 %v792_v1  ;;  %s1036_s25 = smov (!%p296_p2, %s935_s25), 1  ;;  %v678_v10 = vld [vmem:[%s1027_s2] ss:$0 sm:$0xff]  ;;  %v800_v45 = vld [vmem:[#allocation4 + $0x38] sm:$0xff]   ;;  %v801_v46 = vld [vmem:[#allocation4 + $0x30] sm:$0xff]  }
  0x2d   : > { %720 = vmatprep.subr.bf16.mxu0 %v886_v0  ;;  %s676_s17 = sshll.u32 %s1036_s25, 2  ;;  %739 = vmatpush3.bf16.msra.mxu1 %v800_v45  ;;  %vm452_vm2 = vcmp.lt.s32.totalorder %v451_v48, 32  ;;  %v802_v54 = vld [vmem:[#allocation4 + $0x28] sm:$0xff]   ;;  %v803_v55 = vld [vmem:[#allocation4 + $0x20] sm:$0xff]   ;;  %v804_v56 = vld [vmem:[#allocation4 + $0x18] sm:$0xff]   ;;  %s677_s29 = sshll.u32 %s1036_s25, 3 }
  0x2e   : > { %s299_s20 = scalar_lea.vmem %s1025_s0, %s676_s17  ;;  %740 = vmatprep.subr.bf16.mxu1 %v886_v0  ;;  %v805_v57 = vld [vmem:[#allocation4 + $0x10] sm:$0xff]   ;;  %v806_v58 = vld [vmem:[#allocation4 + $0x8] sm:$0xff]   ;;  %v807_v59 = vld [vmem:[#allocation4] sm:$0xff]   ;;  %s303_s11 = scalar_lea.vmem %s1032_s7, %s677_s29 }
  0x2f   : > { %v305_v9 = vld [vmem:[%s299_s20] sm:$0xf] }
  0x30   : > { %721 = vmatpush3.bf16.msra.mxu0 %v793_v2  ;;  %v687_v1 = vld [vmem:[%s1028_s3] ss:$0 sm:$0xff] }
  0x31   : > { %722 = vmatprep.subr.bf16.mxu0 %v886_v0  ;;  %741 = vmatpush3.bf16.msra.mxu1 %v801_v46 }
  0x32   : > { %742 = vmatprep.subr.bf16.mxu1 %v886_v0 }
  0x34   : > { %723 = vmatpush3.bf16.msra.mxu0 %v794_v3  ;;  %v688_v3 = vld [vmem:[%s1029_s4] ss:$0 sm:$0xff] }
  0x35   : > { %724 = vmatprep.subr.bf16.mxu0 %v886_v0  ;;  %743 = vmatpush3.bf16.msra.mxu1 %v802_v54 }
  0x36   : > { %744 = vmatprep.subr.bf16.mxu1 %v886_v0 }
  0x38   : > { %725 = vmatpush3.bf16.msra.mxu0 %v795_v4 }
  0x39   : > { %726 = vmatprep.subr.bf16.mxu0 %v886_v0  ;;  %745 = vmatpush3.bf16.msra.mxu1 %v803_v55 }
  0x3a   : > { %746 = vmatprep.subr.bf16.mxu1 %v886_v0 }
  0x3c   : > { %727 = vmatpush3.bf16.msra.mxu0 %v796_v5 }
  0x3d   : > { %728 = vmatprep.subr.bf16.mxu0 %v886_v0  ;;  %747 = vmatpush3.bf16.msra.mxu1 %v804_v56 }
  0x3e   : > { %748 = vmatprep.subr.bf16.mxu1 %v886_v0 }
  0x40   : > { %729 = vmatpush3.bf16.msra.mxu0 %v797_v6 }
  0x41   : > { %730 = vmatprep.subr.bf16.mxu0 %v886_v0  ;;  %749 = vmatpush3.bf16.msra.mxu1 %v805_v57 }
  0x42   : > { %750 = vmatprep.subr.bf16.mxu1 %v886_v0 }
  0x44   : > { %731 = vmatpush3.bf16.msra.mxu0 %v798_v7 }
  0x45   : > { %732 = vmatprep.subr.bf16.mxu0 %v886_v0  ;;  %751 = vmatpush3.bf16.msra.mxu1 %v806_v58 }
  0x46   : > { %752 = vmatprep.subr.bf16.mxu1 %v886_v0  ;;  %v689_v0 = vld [vmem:[%s1031_s6] ss:$0 sm:$0xff] }
  0x48   : > { %733 = vmatpush3.bf16.msra.mxu0 %v799_v8 }
  0x49   : > { %753 = vmatpush3.bf16.msra.mxu1 %v807_v59 }
  0x4b   : > { %735 = vmatmul.mubr.bf16.vlgmr.msra.gmra.mxu0 %v305_v9 }
 0x10b   : > { %v411_v11 = vpop.f32.mrf.mxu0 }
 0x10c   : > { %v412_v12 = vadd.f32 %v678_v10, %v411_v11 }
 0x10d   : > { %v736_v13 = vpop.f32.mrf.mxu0 }
 0x10e   : > { %v418_v14 = vmul.f32 0.70710677, %v412_v12  ;;  %v417_v42 = vmul.f32 0.5, %v412_v12 }
 0x10f   : > { %v414_v15 = vpop.f32.mrf.mxu0 }
 0x110   : > { %v421_v16 = vand.u32 2147483647, %v418_v14  ;;  %vm419_vm1 = vcmp.lt.f32.partialorder %v418_v14, 0.0 }
 0x111   : > { %v737_v17 = vpop.f32.mrf.mxu0  ;;  %v420_v40 = vsel %vm419_vm1, -1.0, %v888_v39 }
 0x112   : > { %v422_v18 = vmul.f32 0.3275911, %v421_v16  ;;  %v437_v20 = vsub.f32 0.0, %v421_v16 }
 0x114   : > { %v423_v19 = vadd.f32 1.0, %v422_v18  ;;  %v438_v24 = vmul.f32 %v437_v20, %v421_v16 }
 0x116   : > { %808 = vrcp.f32 %v423_v19  ;;  %v439_v26 = vmul.f32 1.442695, %v438_v24 }
 0x118   : > { %810 = vpow2.f32 %v439_v26 }
 0x123   : > { %v809_v21 = vpop.eup %808 }
 0x124   : > { %v425_v22 = vmul.f32 %v809_v21, %v423_v19 }
 0x125   : > { %v811_v36 = vpop.eup %810 }
 0x126   : > { %v426_v23 = vsub.f32 2.0, %v425_v22 }
 0x128   : > { %v427_v25 = vmul.f32 %v809_v21, %v426_v23 }
 0x12a   : > { %v428_v27 = vmul.f32 1.0614054, %v427_v25 }
 0x12c   : > { %v429_v28 = vadd.f32 -1.4531521, %v428_v27 }
 0x12e   : > { %v430_v29 = vmul.f32 %v429_v28, %v427_v25 }
 0x130   : > { %v431_v30 = vadd.f32 1.4214138, %v430_v29 }
 0x132   : > { %v432_v31 = vmul.f32 %v431_v30, %v427_v25 }
 0x134   : > { %v433_v32 = vadd.f32 -0.28449672, %v432_v31 }
 0x136   : > { %v434_v33 = vmul.f32 %v433_v32, %v427_v25 }
 0x138   : > { %v435_v34 = vadd.f32 0.2548296, %v434_v33 }
 0x13a   : > { %v436_v35 = vmul.f32 %v435_v34, %v427_v25 }
 0x13c   : > { %v441_v37 = vmul.f32 %v811_v36, %v436_v35 }
 0x13e   : > { %v442_v38 = vsub.f32 1.0, %v441_v37 }
 0x140   : > { %v443_v41 = vmul.f32 %v442_v38, %v420_v40 }
 0x142   : > { %v444_v43 = vadd.f32 1.0, %v443_v41 }
 0x144   : > { %v445_v44 = vmul.f32 %v444_v43, %v417_v42 }
 0x146   : > { %446 = vadd.xlane.f32.xlu0 %v445_v44 }
 0x1cf   : > { %v447_v49 = vpop.xlane.xlu0 %446 }
 0x1d0   : > { %v448_v50 = vmul.f32 0.03125, %v447_v49 }
 0x1d2   : > { %v449_v51 = vsub.f32 %v445_v44, %v448_v50 }
 0x1d4   : > { %v455_v52 = vsel %vm452_vm2, %v449_v51, 0.0 }
 0x1d5   : > { %v456_v53 = vmul.f32 %v455_v52, %v455_v52 }
 0x1d7   : > { %457 = vadd.xlane.f32.xlu0 %v456_v53 }
 0x260   : > { %v458_v60 = vpop.xlane.xlu0 %457 }
 0x261   : > { %v459_v61 = vmul.f32 0.03125, %v458_v60 }
 0x263   : > { %v460_v62 = vadd.f32 1e-12, %v459_v61 }
 0x265   : > { %812 = vrsqrt.f32 %v460_v62 }
 0x272   : > { %v813_v63 = vpop.eup %812 }
 0x273   : > { %v462_v2 = vmul.f32 %v813_v63, %v449_v51 }
 0x275   : > { %v470_v4 = vmul.f32 %v687_v1, %v462_v2 }
 0x277   : > { %v478_v5 = vadd.f32 %v688_v3, %v470_v4 }
 0x279   : > { %v479_v6 = vpack.c.bf16 %v478_v5, %v478_v5 }
 0x27b   : > { %755 = vmatmul.mubr.bf16.vlgmr.msra.gmra.mxu1 %v479_v6 }
 0x33b   : > { %v585_v7 = vpop.f32.mrf.mxu1 }
 0x33c   : > { %v586_v8 = vadd.f32 %v689_v0, %v585_v7 }
 0x33d   : > { %v756_v9 = vpop.f32.mrf.mxu1 }
 0x33e   : > { %591 = vst [vmem:[%s303_s11] sm:$0xff] %v586_v8 }
 0x33f   : > { %v588_v10 = vpop.f32.mrf.mxu1 }
 0x341   : > { %v757_v11 = vpop.f32.mrf.mxu1 }
 0x342 PF: > { %s19_s24 = sadd.s32 1, %s880_s24  }
 0x343   : > { %p16_p3 = scmp.ge.s32.totalorder %s19_s24, 4  }
 0x345   :  { %18 = sbr.rel (!%p16_p3) target bundleno = 2 (0x2), region = 87 }
 0x34a   :  { %611 = vsyncpa [#allocation3], 1 }
 0x34b   :  { %613 = vsyncpa [#allocation3 + $0x1], 1 }
 0x34c   :  { %614 = vsyncpa [#allocation5], 1 }

// kernel: output_process.1
= control target key start
LH: loop header
LB: loop body
LE: loop exit
PB: predicated region body
PF: predicated region fallthrough
CT: control target
= control target key end

     0   :  { %12 = vsyncpa [#allocation3], 0  ;;  %s1025_s0 = inlined_call_operand.vmem [shape: bf16[16,128], index: 0, kind: input, shape index: {}]   ;;  %s1026_s1 = inlined_call_operand.hbm [shape: bf16[128,128], index: 1, kind: input, shape index: {}]   ;;  %s1027_s2 = inlined_call_operand.vmem [shape: f32[1,128], index: 2, kind: input, shape index: {}]   ;;  %s1028_s3 = inlined_call_operand.vmem [shape: f32[1,128], index: 3, kind: input, shape index: {}]   ;;  %s1029_s4 = inlined_call_operand.vmem [shape: f32[1,128], index: 4, kind: input, shape index: {}]   ;;  %s1030_s5 = inlined_call_operand.hbm [shape: bf16[128,128], index: 5, kind: input, shape index: {}]   ;;  %s1031_s6 = inlined_call_operand.vmem [shape: f32[1,128], index: 6, kind: input, shape index: {}]   ;;  %s1032_s7 = inlined_call_operand.vmem [shape: f32[16,128], index: 7, kind: output, shape index: {}]  }
   0x1   :  { %13 = vsyncpa [#allocation5], 0  ;;  %s929_s24 = smov 0  }
   0x2 LB: > { %s935_s25 = sadd.s32 4294967295, %s880_s24   ;;  %p669_p0 = scmp.ge.s32.totalorder %s880_s24, 1  ;;  %s880_s24 = sphi %s929_s24, %s19_s24  }
   0x3   : > { %p202_p1 = scmp.lt.s32.totalorder %s880_s24, 3  ;;  %s882_s26 = smov [#allocation2]  }
   0x4   : > { %s214_s27 = sshll.u32 %s882_s26, 4  ;;  %p773_p3 = scmp.eq.s32.totalorder %s935_s25, 0  ;;  %s215_s27 = int_to_ptr.vmem [resolvable:$true] %s214_s27 }
   0x5   : > { %p939_p2 = pnand %p669_p0, %p202_p1  ;;  %s883_s29 = smov [#allocation4]  }
   0x6   : > { %s236_s30 = sshll.u32 %s883_s29, 4  ;;  %s825_s9 = scalar_lea.vmem %s215_s27, 1024  ;;  %s237_s30 = int_to_ptr.vmem [resolvable:$true] %s236_s30 }
   0x7   : > { %p766_p4 = pneg %p939_p2  ;;  %p826_p7 = scmp.ne.s32.totalorder %s215_s27, %s825_s9 }
   0x8   : > { %p833_p10 = scmp.lt.s32.totalorder %s215_s27, %s215_s27  ;;  %p834_p11 = scmp.lt.s32.totalorder %s825_s9, %s825_s9 }
   0x9   : > { %p948_p5 = pnand %p773_p3, %p766_p4 }
   0xa   : > { %p835_p12 = por %p834_p11, %p833_p10 }
   0xb   : > { %p816_p6 = pneg %p948_p5 }
   0xd   : > { %p828_p8 = pnand %p826_p7, %p816_p6 }
   0xf   : > { %p829_p9 = pneg %p828_p8 }
  0x11   : > { %p836_p13 = pnand %p835_p12, %p829_p9 }
  0x13   : > { %839 = shalt.err (!%p836_p13)
}
  0x14   : > { %s884_s10 = smov 64   ;;  %s885_s11 = smov 4  }
  0x15   : > { %769 = dma.hbm_to_vmem [thread:$0]  (!%p948_p5), %s1026_s1, 1024, %s215_s27, [#allocation3], %s884_s10, %s884_s10, %s885_s11  }
  0x16   : > { %s851_s14 = scalar_lea.vmem %s237_s30, 1024  ;;  %p859_p7 = scmp.lt.s32.totalorder %s237_s30, %s237_s30 }
  0x17   : > { %p852_p0 = scmp.ne.s32.totalorder %s237_s30, %s851_s14  ;;  %p860_p8 = scmp.lt.s32.totalorder %s851_s14, %s851_s14 }
  0x19   : > { %p854_p1 = pnand %p852_p0, %p816_p6  ;;  %p861_p10 = por %p860_p8, %p859_p7 }
  0x1b   : > { %p855_p4 = pneg %p854_p1 }
  0x1d   : > { %p862_p9 = pnand %p861_p10, %p855_p4 }
  0x1f   : > { %865 = shalt.err (!%p862_p9)
}
  0x20   : > { %772 = dma.hbm_to_vmem [thread:$0]  (!%p948_p5), %s1030_s5, 1024, %s237_s30, [#allocation5], %s884_s10, %s884_s10, %s885_s11  }
  0x21   : > { %262 = sbr.rel (%p939_p2) target bundleno = 834 (0x342), region = 48 }
  0x26   : > { %871 = dma.done.wait (%p773_p3), [#allocation3], 1024  }
  0x27   : > { %873 = vsyncadd (%p773_p3), [#allocation3], 4294966272 }
  0x28   : > { %875 = dma.done.wait (%p773_p3), [#allocation5], 1024  }
  0x29   : > { %877 = vsyncadd (%p773_p3), [#allocation5], 4294966272  ;;  %v886_v0 = vmov 0.0   ;;  %vm887_vm0 = vmmov 0   ;;  %v792_v1 = vld [vmem:[#allocation2 + $0x38] sm:$0xff]   ;;  %v793_v2 = vld [vmem:[#allocation2 + $0x30] sm:$0xff]   ;;  %v450_v47 = vlaneseq }
  0x2a   : > { %718 = vmatprep.subr.bf16.mxu0 %v886_v0  ;;  %734 = vmatprep.mubr.msk.bf16.mxu0 %vm887_vm0, %v886_v0  ;;  %v794_v3 = vld [vmem:[#allocation2 + $0x28] sm:$0xff]   ;;  %v795_v4 = vld [vmem:[#allocation2 + $0x20] sm:$0xff]   ;;  %v796_v5 = vld [vmem:[#allocation2 + $0x18] sm:$0xff]   ;;  %p296_p2 = scmp.lt.s32.totalorder %s935_s25, 1  ;;  %v888_v39 = vmov 1.0  }
  0x2b   : > { %738 = vmatprep.subr.bf16.mxu1 %v886_v0  ;;  %754 = vmatprep.mubr.msk.bf16.mxu1 %vm887_vm0, %v886_v0  ;;  %v797_v6 = vld [vmem:[#allocation2 + $0x10] sm:$0xff]   ;;  %v798_v7 = vld [vmem:[#allocation2 + $0x8] sm:$0xff]   ;;  %v799_v8 = vld [vmem:[#allocation2] sm:$0xff]   ;;  %v451_v48 = vand.u32 127, %v450_v47 }
  0x2c   : > { %719 = vmatpush3.bf16.msra.mxu0 %v792_v1  ;;  %s1036_s25 = smov (!%p296_p2, %s935_s25), 1  ;;  %v678_v10 = vld [vmem:[%s1027_s2] ss:$0 sm:$0xff]  ;;  %v800_v45 = vld [vmem:[#allocation4 + $0x38] sm:$0xff]   ;;  %v801_v46 = vld [vmem:[#allocation4 + $0x30] sm:$0xff]  }
  0x2d   : > { %720 = vmatprep.subr.bf16.mxu0 %v886_v0  ;;  %s676_s17 = sshll.u32 %s1036_s25, 2  ;;  %739 = vmatpush3.bf16.msra.mxu1 %v800_v45  ;;  %vm452_vm2 = vcmp.lt.s32.totalorder %v451_v48, 32  ;;  %v802_v54 = vld [vmem:[#allocation4 + $0x28] sm:$0xff]   ;;  %v803_v55 = vld [vmem:[#allocation4 + $0x20] sm:$0xff]   ;;  %v804_v56 = vld [vmem:[#allocation4 + $0x18] sm:$0xff]   ;;  %s677_s29 = sshll.u32 %s1036_s25, 3 }
  0x2e   : > { %s299_s20 = scalar_lea.vmem %s1025_s0, %s676_s17  ;;  %740 = vmatprep.subr.bf16.mxu1 %v886_v0  ;;  %v805_v57 = vld [vmem:[#allocation4 + $0x10] sm:$0xff]   ;;  %v806_v58 = vld [vmem:[#allocation4 + $0x8] sm:$0xff]   ;;  %v807_v59 = vld [vmem:[#allocation4] sm:$0xff]   ;;  %s303_s11 = scalar_lea.vmem %s1032_s7, %s677_s29 }
  0x2f   : > { %v305_v9 = vld [vmem:[%s299_s20] sm:$0xf] }
  0x30   : > { %721 = vmatpush3.bf16.msra.mxu0 %v793_v2  ;;  %v687_v1 = vld [vmem:[%s1028_s3] ss:$0 sm:$0xff] }
  0x31   : > { %722 = vmatprep.subr.bf16.mxu0 %v886_v0  ;;  %741 = vmatpush3.bf16.msra.mxu1 %v801_v46 }
  0x32   : > { %742 = vmatprep.subr.bf16.mxu1 %v886_v0 }
  0x34   : > { %723 = vmatpush3.bf16.msra.mxu0 %v794_v3  ;;  %v688_v3 = vld [vmem:[%s1029_s4] ss:$0 sm:$0xff] }
  0x35   : > { %724 = vmatprep.subr.bf16.mxu0 %v886_v0  ;;  %743 = vmatpush3.bf16.msra.mxu1 %v802_v54 }
  0x36   : > { %744 = vmatprep.subr.bf16.mxu1 %v886_v0 }
  0x38   : > { %725 = vmatpush3.bf16.msra.mxu0 %v795_v4 }
  0x39   : > { %726 = vmatprep.subr.bf16.mxu0 %v886_v0  ;;  %745 = vmatpush3.bf16.msra.mxu1 %v803_v55 }
  0x3a   : > { %746 = vmatprep.subr.bf16.mxu1 %v886_v0 }
  0x3c   : > { %727 = vmatpush3.bf16.msra.mxu0 %v796_v5 }
  0x3d   : > { %728 = vmatprep.subr.bf16.mxu0 %v886_v0  ;;  %747 = vmatpush3.bf16.msra.mxu1 %v804_v56 }
  0x3e   : > { %748 = vmatprep.subr.bf16.mxu1 %v886_v0 }
  0x40   : > { %729 = vmatpush3.bf16.msra.mxu0 %v797_v6 }
  0x41   : > { %730 = vmatprep.subr.bf16.mxu0 %v886_v0  ;;  %749 = vmatpush3.bf16.msra.mxu1 %v805_v57 }
  0x42   : > { %750 = vmatprep.subr.bf16.mxu1 %v886_v0 }
  0x44   : > { %731 = vmatpush3.bf16.msra.mxu0 %v798_v7 }
  0x45   : > { %732 = vmatprep.subr.bf16.mxu0 %v886_v0  ;;  %751 = vmatpush3.bf16.msra.mxu1 %v806_v58 }
  0x46   : > { %752 = vmatprep.subr.bf16.mxu1 %v886_v0  ;;  %v689_v0 = vld [vmem:[%s1031_s6] ss:$0 sm:$0xff] }
  0x48   : > { %733 = vmatpush3.bf16.msra.mxu0 %v799_v8 }
  0x49   : > { %753 = vmatpush3.bf16.msra.mxu1 %v807_v59 }
  0x4b   : > { %735 = vmatmul.mubr.bf16.vlgmr.msra.gmra.mxu0 %v305_v9 }
 0x10b   : > { %v411_v11 = vpop.f32.mrf.mxu0 }
 0x10c   : > { %v412_v12 = vadd.f32 %v678_v10, %v411_v11 }
 0x10d   : > { %v736_v13 = vpop.f32.mrf.mxu0 }
 0x10e   : > { %v418_v14 = vmul.f32 0.70710677, %v412_v12  ;;  %v417_v42 = vmul.f32 0.5, %v412_v12 }
 0x10f   : > { %v414_v15 = vpop.f32.mrf.mxu0 }
 0x110   : > { %v421_v16 = vand.u32 2147483647, %v418_v14  ;;  %vm419_vm1 = vcmp.lt.f32.partialorder %v418_v14, 0.0 }
 0x111   : > { %v737_v17 = vpop.f32.mrf.mxu0  ;;  %v420_v40 = vsel %vm419_vm1, -1.0, %v888_v39 }
 0x112   : > { %v422_v18 = vmul.f32 0.3275911, %v421_v16  ;;  %v437_v20 = vsub.f32 0.0, %v421_v16 }
 0x114   : > { %v423_v19 = vadd.f32 1.0, %v422_v18  ;;  %v438_v24 = vmul.f32 %v437_v20, %v421_v16 }
 0x116   : > { %808 = vrcp.f32 %v423_v19  ;;  %v439_v26 = vmul.f32 1.442695, %v438_v24 }
 0x118   : > { %810 = vpow2.f32 %v439_v26 }
 0x123   : > { %v809_v21 = vpop.eup %808 }
 0x124   : > { %v425_v22 = vmul.f32 %v809_v21, %v423_v19 }
 0x125   : > { %v811_v36 = vpop.eup %810 }
 0x126   : > { %v426_v23 = vsub.f32 2.0, %v425_v22 }
 0x128   : > { %v427_v25 = vmul.f32 %v809_v21, %v426_v23 }
 0x12a   : > { %v428_v27 = vmul.f32 1.0614054, %v427_v25 }
 0x12c   : > { %v429_v28 = vadd.f32 -1.4531521, %v428_v27 }
 0x12e   : > { %v430_v29 = vmul.f32 %v429_v28, %v427_v25 }
 0x130   : > { %v431_v30 = vadd.f32 1.4214138, %v430_v29 }
 0x132   : > { %v432_v31 = vmul.f32 %v431_v30, %v427_v25 }
 0x134   : > { %v433_v32 = vadd.f32 -0.28449672, %v432_v31 }
 0x136   : > { %v434_v33 = vmul.f32 %v433_v32, %v427_v25 }
 0x138   : > { %v435_v34 = vadd.f32 0.2548296, %v434_v33 }
 0x13a   : > { %v436_v35 = vmul.f32 %v435_v34, %v427_v25 }
 0x13c   : > { %v441_v37 = vmul.f32 %v811_v36, %v436_v35 }
 0x13e   : > { %v442_v38 = vsub.f32 1.0, %v441_v37 }
 0x140   : > { %v443_v41 = vmul.f32 %v442_v38, %v420_v40 }
 0x142   : > { %v444_v43 = vadd.f32 1.0, %v443_v41 }
 0x144   : > { %v445_v44 = vmul.f32 %v444_v43, %v417_v42 }
 0x146   : > { %446 = vadd.xlane.f32.xlu0 %v445_v44 }
 0x1cf   : > { %v447_v49 = vpop.xlane.xlu0 %446 }
 0x1d0   : > { %v448_v50 = vmul.f32 0.03125, %v447_v49 }
 0x1d2   : > { %v449_v51 = vsub.f32 %v445_v44, %v448_v50 }
 0x1d4   : > { %v455_v52 = vsel %vm452_vm2, %v449_v51, 0.0 }
 0x1d5   : > { %v456_v53 = vmul.f32 %v455_v52, %v455_v52 }
 0x1d7   : > { %457 = vadd.xlane.f32.xlu0 %v456_v53 }
 0x260   : > { %v458_v60 = vpop.xlane.xlu0 %457 }
 0x261   : > { %v459_v61 = vmul.f32 0.03125, %v458_v60 }
 0x263   : > { %v460_v62 = vadd.f32 1e-12, %v459_v61 }
 0x265   : > { %812 = vrsqrt.f32 %v460_v62 }
 0x272   : > { %v813_v63 = vpop.eup %812 }
 0x273   : > { %v462_v2 = vmul.f32 %v813_v63, %v449_v51 }
 0x275   : > { %v470_v4 = vmul.f32 %v687_v1, %v462_v2 }
 0x277   : > { %v478_v5 = vadd.f32 %v688_v3, %v470_v4 }
 0x279   : > { %v479_v6 = vpack.c.bf16 %v478_v5, %v478_v5 }
 0x27b   : > { %755 = vmatmul.mubr.bf16.vlgmr.msra.gmra.mxu1 %v479_v6 }
 0x33b   : > { %v585_v7 = vpop.f32.mrf.mxu1 }
 0x33c   : > { %v586_v8 = vadd.f32 %v689_v0, %v585_v7 }
 0x33d   : > { %v756_v9 = vpop.f32.mrf.mxu1 }
 0x33e   : > { %591 = vst [vmem:[%s303_s11] sm:$0xff] %v586_v8 }
 0x33f   : > { %v588_v10 = vpop.f32.mrf.mxu1 }
 0x341   : > { %v757_v11 = vpop.f32.mrf.mxu1 }
 0x342 PF: > { %s19_s24 = sadd.s32 1, %s880_s24  }
 0x343   : > { %p16_p3 = scmp.ge.s32.totalorder %s19_s24, 4  }
 0x345   :  { %18 = sbr.rel (!%p16_p3) target bundleno = 2 (0x2), region = 87 }
 0x34a   :  { %611 = vsyncpa [#allocation3], 1 }
 0x34b   :  { %613 = vsyncpa [#allocation3 + $0x1], 1 }
 0x34c   :  { %614 = vsyncpa [#allocation5], 1 }

</bundles_post_ra>
